<compile_context>
chip_gen: v7x
topology: tpu7x:2x2x1
jax: 0.10.0
libtpu: 0.0.40
codegen_flags: <defaults>
</compile_context>

<pallas_src>
import functools
import math

import jax
import jax.numpy as jnp
from jax.experimental import pallas as pl
from jax.experimental.pallas import tpu as pltpu


def self_attention_kernel(x_ref, w_ref, b_ref, o_ref, *, d_qk, d_v):
    """One grid step = a block of TB batches.

    x_ref : (TB, N, C*L)            bf16  token rows, fused (channel, length) features
    w_ref : (C*L, 2*QK*L + C*L)     bf16  fused [Wq*scale | Wk | Wv] block-diag weight
    b_ref : (1, 2*QK*L + C*L)       f32   fused biases (softmax scale folded into q part)
    o_ref : (TB, N, C*L)            bf16  attention output, same feature layout as x
    """
    TB, N, D = x_ref.shape

    # Fused q/k/v projection: one bf16 MXU matmul with f32 accumulation.
    # (reshape only merges leading dims -> no lane/sublane relayout)
    xm = x_ref[...].reshape(TB * N, D)
    qkv = jnp.dot(xm, w_ref[...], preferred_element_type=jnp.float32) + b_ref[...]

    q = qkv[:, :d_qk].astype(jnp.bfloat16).reshape(TB, N, d_qk)
    k = qkv[:, d_qk:2 * d_qk].astype(jnp.bfloat16).reshape(TB, N, d_qk)
    v = qkv[:, 2 * d_qk:].astype(jnp.bfloat16).reshape(TB, N, d_v)

    # Scores: per-batch matmul contracting the fused (channel, l) feature axis
    # (scale already folded into the query projection).
    s = jnp.einsum('bnd,bmd->bnm', q, k,
                   preferred_element_type=jnp.float32)            # (TB, N, N)

    # Softmax over keys: f32 element-wise math; reciprocal on the EUP slot.
    s = s - jnp.max(s, axis=-1, keepdims=True)
    e = jnp.exp(s)
    beta = e * pl.reciprocal(jnp.sum(e, axis=-1, keepdims=True), approx=True)

    # Attention-weighted sum of values (per-batch matmul).
    out = jnp.einsum('bnm,bmd->bnd', beta.astype(jnp.bfloat16), v,
                     preferred_element_type=jnp.float32)          # (TB, N, d_v)

    o_ref[...] = out.astype(o_ref.dtype)


def _pick_batch_block(batch, per_batch_bytes, *, vmem_budget_bytes=6 << 20,
                      target_steps=8):
    """Largest divisor of `batch` within the VMEM budget that still leaves
    >= min(batch, target_steps) grid steps (megacore + pipeline steady state)."""
    if batch <= 1:
        return 1
    steps = min(batch, target_steps)
    cap = min(max(1, vmem_budget_bytes // max(1, per_batch_bytes)),
              max(1, batch // steps))
    tb = 1
    for d in range(1, min(cap, batch) + 1):
        if batch % d == 0:
            tb = d
    return tb


def self_attention(x, wq, bq, wk, bk, wv, bv, *, batch_block=None):
    """x: (B, N, C, L); wq/wk: (QK, C); wv: (C, C); bq/bk: (QK,); bv: (C,)."""
    B, N, C, L = x.shape
    QK = wq.shape[0]
    d_qk, d_v = QK * L, C * L
    d_out = 2 * d_qk + d_v

    # Token rows with the fused (channel, length) feature axis — exactly the
    # flattening the PyTorch module uses.  Contiguous reshape (free), bf16
    # halves the x DMA and feeds the MXU its native dtype.
    x2 = x.reshape(B, N, d_v).astype(jnp.bfloat16)

    # Fuse the three 1x1 convs into one block-diagonal weight over the fused
    # feature axis:  W[c*L + l, o*L + l'] = W_proj[o, c] * delta(l, l').
    # The 1/sqrt(QK*L) softmax scale is folded into the query columns (exact).
    scale = 1.0 / math.sqrt(d_qk)
    eye_l = jnp.eye(L, dtype=jnp.float32)
    w_fused = jnp.concatenate([
        jnp.kron(wq.astype(jnp.float32).T * scale, eye_l),    # (C*L, QK*L)
        jnp.kron(wk.astype(jnp.float32).T, eye_l),            # (C*L, QK*L)
        jnp.kron(wv.astype(jnp.float32).T, eye_l),            # (C*L, C*L)
    ], axis=1).astype(jnp.bfloat16)                           # (C*L, d_out)
    b_fused = jnp.concatenate([
        jnp.repeat(bq.astype(jnp.float32) * scale, L),
        jnp.repeat(bk.astype(jnp.float32), L),
        jnp.repeat(bv.astype(jnp.float32), L),
    ])[None, :]                                               # (1, d_out) f32

    # VMEM-budgeted batch block (rough lane-padded, double-buffered estimate).
    def lane(d):
        return pl.cdiv(max(d, 1), 128) * 128
    per_batch_bytes = N * (
        2 * 2 * lane(d_v)                      # x block (bf16, double-buffered)
        + 4 * lane(d_out)                      # fused qkv (f32)
        + 2 * (2 * lane(d_qk) + lane(d_v))     # q/k/v bf16 copies
        + 2 * 4 * lane(N)                      # scores / beta (f32)
        + 4 * lane(d_v)                        # context (f32)
        + 2 * 2 * lane(d_v))                   # out block (bf16, double-buffered)
    TB = batch_block if batch_block is not None else _pick_batch_block(
        B, per_batch_bytes)
    assert B % TB == 0, (B, TB)
    grid = (B // TB,)

    kernel = functools.partial(self_attention_kernel, d_qk=d_qk, d_v=d_v)
    out = pl.pallas_call(
        kernel,
        out_shape=jax.ShapeDtypeStruct((B, N, d_v), jnp.bfloat16),
        grid=grid,
        in_specs=[
            pl.BlockSpec((TB, N, d_v), lambda b: (b, 0, 0)),   # x token rows
            pl.BlockSpec((d_v, d_out), lambda b: (0, 0)),      # fused weight
            pl.BlockSpec((1, d_out), lambda b: (0, 0)),        # fused bias
        ],
        out_specs=pl.BlockSpec((TB, N, d_v), lambda b: (b, 0, 0)),
        compiler_params=pltpu.CompilerParams(
            dimension_semantics=("parallel",),
            vmem_limit_bytes=32 * 1024 * 1024),
    )(x2, w_fused, b_fused)

    # (B, N, C*L) -> (B, N, C, L); cast back to the module's f32 output dtype.
    return out.reshape(B, N, C, L).astype(jnp.float32)


def reference(x, wq, bq, wk, bk, wv, bv):
    """Pure-JAX re-statement of the PyTorch forward (f32 exact)."""
    B, N, C, L = x.shape
    xf = x.reshape(B * N, C, L)
    q = jnp.einsum('oc,bcl->bol', wq, xf) + bq[None, :, None]
    k = jnp.einsum('oc,bcl->bol', wk, xf) + bk[None, :, None]
    v = jnp.einsum('oc,bcl->bol', wv, xf) + bv[None, :, None]
    q = q.reshape(B, N, -1)
    k = k.reshape(B, N, -1)
    v = v.reshape(B, N, -1)
    s = jnp.einsum('bnf,bmf->bnm', q, k) / math.sqrt(q.shape[-1])
    beta = jax.nn.softmax(s, axis=-1)
    return jnp.einsum('bnm,bmf->bnf', beta, v).reshape(x.shape)


if __name__ == "__main__":
    B, N, C, L = 2, 8, 4, 16          # x ~ (batch, tokens, n_channels, length)
    QK = 2                            # qk_n_channels

    key = jax.random.PRNGKey(0)
    ks = jax.random.split(key, 7)
    x = jax.random.normal(ks[0], (B, N, C, L), dtype=jnp.float32)

    # Deterministic Conv1d(k=1) parameters; weight stored as (out, in) with the
    # trivial kernel dim squeezed. Uniform(-1/sqrt(C), 1/sqrt(C)) like PyTorch.
    bound = 1.0 / math.sqrt(C)
    wq = jax.random.uniform(ks[1], (QK, C), jnp.float32, -bound, bound)
    bq = jax.random.uniform(ks[2], (QK,), jnp.float32, -bound, bound)
    wk = jax.random.uniform(ks[3], (QK, C), jnp.float32, -bound, bound)
    bk = jax.random.uniform(ks[4], (QK,), jnp.float32, -bound, bound)
    wv = jax.random.uniform(ks[5], (C, C), jnp.float32, -bound, bound)
    bv = jax.random.uniform(ks[6], (C,), jnp.float32, -bound, bound)

    run = jax.jit(self_attention)
    out = jax.block_until_ready(run(x, wq, bq, wk, bk, wv, bv))
    ref = jax.block_until_ready(reference(x, wq, bq, wk, bk, wv, bv))

    assert out.shape == x.shape, (out.shape, x.shape)
    # bf16 MXU operands / bf16 output + approx reciprocal => bf16-level tolerance
    assert jnp.allclose(out, ref, atol=5e-2, rtol=5e-2), float(
        jnp.max(jnp.abs(out - ref)))
    print("KERNEL_OK")
</pallas_src>

<mosaic_0001>
module attributes {stable_mosaic.version = 11 : i64} {
  func.func @self_attention_kernel(%arg0: i32, %arg1: memref<1x8x64xbf16, #tpu.memory_space<vmem>>, %arg2: memref<64x128xbf16, #tpu.memory_space<vmem>>, %arg3: memref<1x128xf32, #tpu.memory_space<vmem>>, %arg4: memref<1x8x64xbf16, #tpu.memory_space<vmem>>) attributes {dimension_semantics = [#tpu.dimension_semantics<parallel>], iteration_bounds = array<i64: 2>, scalar_prefetch = 0 : i64, scratch_operands = 0 : i64, tpu.core_type = #tpu.core_type<tc>, window_params = [{transform_indices = @transform_0, window_bounds = array<i64: 1, 8, 64>}, {pipeline_mode = #tpu.pipeline_mode<synchronous>, transform_indices = @transform_1, window_bounds = array<i64: 64, 128>}, {pipeline_mode = #tpu.pipeline_mode<synchronous>, transform_indices = @transform_2, window_bounds = array<i64: 1, 128>}, {transform_indices = @transform_3, window_bounds = array<i64: 1, 8, 64>}]} {
    %c0 = arith.constant 0 : index
    %c0_0 = arith.constant 0 : index
    %c0_1 = arith.constant 0 : index
    %0 = vector.load %arg1[%c0, %c0_0, %c0_1] : memref<1x8x64xbf16, #tpu.memory_space<vmem>>, vector<1x8x64xbf16>
    %1 = vector.shape_cast %0 : vector<1x8x64xbf16> to vector<8x64xbf16>
    %c0_2 = arith.constant 0 : index
    %c0_3 = arith.constant 0 : index
    %2 = vector.load %arg2[%c0_2, %c0_3] : memref<64x128xbf16, #tpu.memory_space<vmem>>, vector<64x128xbf16>
    %cst = arith.constant dense<0.000000e+00> : vector<8x128xf32>
    %3 = tpu.matmul %1, %2, %cst {dimension_numbers = #tpu.dot_dimension_numbers<[1], [0], [0], [1], [0, 0, 1, 1], [], []>} : vector<8x64xbf16>, vector<64x128xbf16>, vector<8x128xf32> -> vector<8x128xf32>
    %c0_4 = arith.constant 0 : index
    %c0_5 = arith.constant 0 : index
    %4 = vector.load %arg3[%c0_4, %c0_5] : memref<1x128xf32, #tpu.memory_space<vmem>>, vector<1x128xf32>
    %5 = vector.broadcast %4 : vector<1x128xf32> to vector<8x128xf32>
    %6 = arith.addf %3, %5 : vector<8x128xf32>
    %7 = vector.extract_strided_slice %6 {offsets = [0, 0], sizes = [8, 32], strides = [1, 1]} : vector<8x128xf32> to vector<8x32xf32>
    %8 = arith.truncf %7 : vector<8x32xf32> to vector<8x32xbf16>
    %9 = vector.shape_cast %8 : vector<8x32xbf16> to vector<1x8x32xbf16>
    %10 = vector.extract_strided_slice %6 {offsets = [0, 32], sizes = [8, 32], strides = [1, 1]} : vector<8x128xf32> to vector<8x32xf32>
    %11 = arith.truncf %10 : vector<8x32xf32> to vector<8x32xbf16>
    %12 = vector.shape_cast %11 : vector<8x32xbf16> to vector<1x8x32xbf16>
    %13 = vector.extract_strided_slice %6 {offsets = [0, 64], sizes = [8, 64], strides = [1, 1]} : vector<8x128xf32> to vector<8x64xf32>
    %14 = arith.truncf %13 : vector<8x64xf32> to vector<8x64xbf16>
    %15 = vector.shape_cast %14 : vector<8x64xbf16> to vector<1x8x64xbf16>
    "tpu.trace_start"() <{level = 10 : i32, message = "bnd,bmd->bnm"}> : () -> ()
    %cst_6 = arith.constant dense<0.000000e+00> : vector<1x8x8xf32>
    %16 = tpu.matmul %9, %12, %cst_6 {dimension_numbers = #tpu.dot_dimension_numbers<[2], [2], [1], [1], [0, 0, 0, 1, 1, 1], [0], [0]>} : vector<1x8x32xbf16>, vector<1x8x32xbf16>, vector<1x8x8xf32> -> vector<1x8x8xf32>
    "tpu.trace_stop"() : () -> ()
    %cst_7 = arith.constant dense<0xFF800000> : vector<1x8xf32>
    %17 = vector.multi_reduction <maximumf>, %16, %cst_7 [2] : vector<1x8x8xf32> to vector<1x8xf32>
    %18 = vector.shape_cast %17 : vector<1x8xf32> to vector<1x8x1xf32>
    %19 = vector.broadcast %18 : vector<1x8x1xf32> to vector<1x8x8xf32>
    %20 = arith.subf %16, %19 : vector<1x8x8xf32>
    %21 = math.exp %20 : vector<1x8x8xf32>
    %cst_8 = arith.constant dense<0.000000e+00> : vector<1x8xf32>
    %22 = vector.multi_reduction <add>, %21, %cst_8 [2] : vector<1x8x8xf32> to vector<1x8xf32>
    %23 = vector.shape_cast %22 : vector<1x8xf32> to vector<1x8x1xf32>
    %24 = tpu.reciprocal %23 {approx = true} : vector<1x8x1xf32> -> vector<1x8x1xf32>
    %25 = vector.broadcast %24 : vector<1x8x1xf32> to vector<1x8x8xf32>
    %26 = arith.mulf %21, %25 : vector<1x8x8xf32>
    %27 = arith.truncf %26 : vector<1x8x8xf32> to vector<1x8x8xbf16>
    "tpu.trace_start"() <{level = 10 : i32, message = "bnm,bmd->bnd"}> : () -> ()
    %cst_9 = arith.constant dense<0.000000e+00> : vector<1x8x64xf32>
    %28 = tpu.matmul %27, %15, %cst_9 {dimension_numbers = #tpu.dot_dimension_numbers<[2], [1], [1], [2], [0, 0, 0, 1, 1, 2], [0], [0]>} : vector<1x8x8xbf16>, vector<1x8x64xbf16>, vector<1x8x64xf32> -> vector<1x8x64xf32>
    "tpu.trace_stop"() : () -> ()
    %29 = arith.truncf %28 : vector<1x8x64xf32> to vector<1x8x64xbf16>
    %c0_10 = arith.constant 0 : index
    %c0_11 = arith.constant 0 : index
    %c0_12 = arith.constant 0 : index
    %30 = vector.load %arg4[%c0_10, %c0_11, %c0_12] : memref<1x8x64xbf16, #tpu.memory_space<vmem>>, vector<1x8x64xbf16>
    tpu.vector_store %arg4[%c0_10, %c0_11, %c0_12], %29 {strides = array<i32>} : memref<1x8x64xbf16, #tpu.memory_space<vmem>>, vector<1x8x64xbf16>,
    return
  }
  func.func @transform_0(%arg0: i32) -> (i32, i32, i32) {
    %c0_i32 = arith.constant 0 : i32
    %c0_i32_0 = arith.constant 0 : i32
    %c0_i32_1 = arith.constant 0 : i32
    return %arg0, %c0_i32, %c0_i32_0 : i32, i32, i32
  }
  func.func @transform_1(%arg0: i32) -> (i32, i32) {
    %c0_i32 = arith.constant 0 : i32
    %c0_i32_0 = arith.constant 0 : i32
    %c0_i32_1 = arith.constant 0 : i32
    return %c0_i32, %c0_i32_0 : i32, i32
  }
  func.func @transform_2(%arg0: i32) -> (i32, i32) {
    %c0_i32 = arith.constant 0 : i32
    %c0_i32_0 = arith.constant 0 : i32
    %c0_i32_1 = arith.constant 0 : i32
    return %c0_i32, %c0_i32_0 : i32, i32
  }
  func.func @transform_3(%arg0: i32) -> (i32, i32, i32) {
    %c0_i32 = arith.constant 0 : i32
    %c0_i32_0 = arith.constant 0 : i32
    %c0_i32_1 = arith.constant 0 : i32
    return %arg0, %c0_i32, %c0_i32_0 : i32, i32, i32
  }
}

</mosaic_0001>

<bundles_post_ra>
// kernel: self_attention.1
= control target key start
LH: loop header
LB: loop body
LE: loop exit
PB: predicated region body
PF: predicated region fallthrough
CT: control target
= control target key end

     0   :  { %s522_s12 = smov 0   ;;  %s567_s0 = inlined_call_operand.vmem [shape: bf16[2,8,64], index: 0, kind: input, shape index: {}]   ;;  %s568_s1 = inlined_call_operand.vmem [shape: bf16[64,128], index: 1, kind: input, shape index: {}]   ;;  %s569_s2 = inlined_call_operand.vmem [shape: f32[1,128], index: 2, kind: input, shape index: {}]   ;;  %s570_s3 = inlined_call_operand.vmem [shape: bf16[2,8,64], index: 3, kind: output, shape index: {}]  }
   0x1 LB: > { %s420_s13 = sadd.s32 4294967295, %s496_s12   ;;  %p424_p0 = scmp.ge.s32.totalorder %s496_s12, 1  ;;  %s496_s12 = sphi %s522_s12, %s13_s12  }
   0x2   : > { %p136_p1 = scmp.lt.s32.totalorder %s496_s12, 3 }
   0x4   : > { %p137_p2 = pnand %p424_p0, %p136_p1 }
   0x5   : > { %v482_v0 = vld [vmem:[%s568_s1] sm:$0xff] (!%p137_p2)   ;;  %v498_v1 = vmov (!%p137_p2), 0.0   ;;  %v483_v2 = vld [vmem:[%s568_s1 + $0x8] sm:$0xff] (!%p137_p2)   ;;  %vm499_vm0 = vmmov (!%p137_p2), 0   ;;  %p158_p3 = scmp.lt.s32.totalorder (!%p137_p2), %s420_s13, 1  ;;  %v484_v3 = vld [vmem:[%s568_s1 + $0x10] sm:$0xff] (!%p137_p2)  }
   0x6   : > { %140 = sbr.rel (%p137_p2) target bundleno = 1104 (0x450), region = 32  ;;  %446 = vmatprep.subr.bf16.mxu0 (!%p137_p2), %v498_v1  ;;  %458 = vmatprep.subr.bf16.mxu1 (!%p137_p2), %v498_v1  ;;  %v485_v4 = vld [vmem:[%s568_s1 + $0x18] sm:$0xff] (!%p137_p2)   ;;  %vm207_vm1 = vcmask (!%p137_p2), 523264   ;;  %v427_v6 = vld [vmem:[%s569_s2] ss:$0 sm:$0xff] (!%p137_p2)  ;;  %s500_s28 = smov (!%p137_p2), 96  }
   0x7   : > { %447 = vmatpush3.bf16.msra.mxu0 (!%p137_p2), %v482_v0  ;;  %454 = vmatprep.mubr.msk.bf16.mxu0 (!%p137_p2), %vm499_vm0, %v498_v1  ;;  %vm255_vm2 = vcmask (!%p137_p2), 261120   ;;  %vm302_vm3 = vcmask (!%p137_p2), 64512   ;;  %s501_s29 = smov (!%p137_p2), 64   ;;  %vm320_vm4 = vcmask (!%p137_p2), 1043456   ;;  %vm365_vm5 = vcmask (!%p137_p2), 519168  }
   0x8   : > { %448 = vmatprep.subr.bf16.mxu0 (!%p137_p2), %v498_v1  ;;  %460 = vmatprep.mubr.msk.bf16.mxu1 (!%p137_p2), %vm499_vm0, %v498_v1 }
   0xb   : > { %449 = vmatpush3.bf16.msra.mxu0 (!%p137_p2), %v483_v2 }
   0xc   : > { %450 = vmatprep.subr.bf16.mxu0 (!%p137_p2), %v498_v1 }
   0xd   : > { %s572_s13 = smov (!%p158_p3, %s420_s13), 1 }
   0xe   : > { %s425_s20 = sshll.u32 %s572_s13, 2 }
   0xf   : > { %451 = vmatpush3.bf16.msra.mxu0 %v484_v3  ;;  %s161_s25 = scalar_lea.vmem %s567_s0, %s425_s20  ;;  %s165_s5 = scalar_lea.vmem %s570_s3, %s425_s20 }
  0x10   : > { %452 = vmatprep.subr.bf16.mxu0 %v498_v1  ;;  %v167_v5 = vld [vmem:[%s161_s25] sm:$0xf] }
  0x13   : > { %453 = vmatpush3.bf16.msra.mxu0 %v485_v4 }
  0x16   : > { %455 = vmatmul.mubr.msk.bf16.vlgmr.msra.gmra.mrb[0].mxu0 %vm207_vm1, %v167_v5 }
  0xe9   : > { %v245_v7 = vpop.f32.mrb[0].mxu0 }
  0xea   : > { %v246_v8 = vadd.f32 %v427_v6, %v245_v7  ;;  %v456_v9 = vpop.f32.mrb[1].mxu0 }
  0xeb   : > { %v248_v10 = vpop.f32.mrb[2].mxu0 }
  0xec   : > { %v251_v11 = vpack.c.bf16 %v246_v8, %v246_v8  ;;  %v457_v12 = vpop.f32.mrb[3].mxu0 }
  0xee   : > { %253 = vrot.lane.b32.xlu0 %v251_v11, %s500_s28 }
 0x160   : > { %v254_v13 = vpop.permute.xlu0 %253 }
 0x161   : > { %v260_v14 = vsel %vm255_vm2, %v254_v13, 0 }
 0x162   : > { %459 = vmatpush3.bf16.xpose.msra.mxu1 %v260_v14 }
 0x163   : > { %464 = vmatprep.subr.bf16.mxu1 %v498_v1 }
 0x169   : > { %461 = vmatmul.mubr.msk.bf16.vlgmr.msra.gmra.mrb[0].mxu1 %vm255_vm2, %v251_v11 }
 0x16a   : > { %466 = vmatprep.mubr.msk.bf16.mxu1 %vm499_vm0, %v498_v1 }
 0x23c   : > { %v296_v15 = vpop.f32.mrb[0].mxu1 }
 0x23d   : > { %v462_v16 = vpop.f32.mrb[1].mxu1  ;;  %v303_v17 = vsel %vm302_vm3, %v296_v15, -inf }
 0x23e   : > { %304 = vmax.xlane.f32.xlu0 %v303_v17  ;;  %v299_v18 = vpop.f32.mrb[2].mxu1 }
 0x23f   : > { %v463_v19 = vpop.f32.mrb[3].mxu1 }
 0x2cb   : > { %v305_v20 = vpop.xlane.xlu0 %304 }
 0x2cc   : > { %v306_v21 = vsub.f32 %v296_v15, %v305_v20 }
 0x2ce   : > { %v307_v22 = vmul.f32 1.442695, %v306_v21 }
 0x2d0   : > { %486 = vpow2.f32 %v307_v22 }
 0x2da   : > { %v487_v23 = vpop.eup %486 }
 0x2db   : > { %v309_v24 = vsel %vm302_vm3, %v487_v23, 0.0 }
 0x2dc   : > { %310 = vadd.xlane.f32.xlu1 %v309_v24 }
 0x2ed   : > { %315 = vrot.lane.b32.xlu1 %v251_v11, %s501_s29 }
 0x369   : > { %v311_v25 = vpop.xlane.xlu1 %310 }
 0x36a   : > { %488 = vrcp.f32 %v311_v25 }
 0x36d   : > { %v316_v26 = vpop.permute.xlu1 %315 }
 0x36e   : > { %v322_v27 = vsel %vm320_vm4, %v316_v26, 0 }
 0x36f   : > { %465 = vmatpush3.bf16.msra.mxu1 %v322_v27 }
 0x374   : > { %v489_v28 = vpop.eup %488 }
 0x375   : > { %v313_v29 = vmul.f32 %v489_v28, %v487_v23 }
 0x377   : > { %v314_v30 = vpack.c.bf16 %v313_v29, %v313_v29 }
 0x379   : > { %467 = vmatmul.mubr.msk.bf16.vlgmr.msra.gmra.mrb[4].mxu1 %vm302_vm3, %v314_v30 }
 0x44c   : > { %v358_v31 = vpop.f32.mrb[4].mxu1 }
 0x44d   : > { %v364_v32 = vpack.c.bf16 %v358_v31, %v358_v31  ;;  %v468_v33 = vpop.f32.mrb[5].mxu1 }
 0x44e   : > { %v361_v34 = vpop.f32.mrb[6].mxu1 }
 0x44f   : > { %366 = vst.msk [vmem:[%s165_s5] sm:$0xf] %vm365_vm5, %v364_v32  ;;  %v469_v35 = vpop.f32.mrb[7].mxu1 }
 0x450 PF: > { %s13_s12 = sadd.s32 1, %s496_s12  }
 0x451   : > { %p10_p4 = scmp.ge.s32.totalorder %s13_s12, 4  }
 0x453   :  { %12 = sbr.rel (!%p10_p4) target bundleno = 1 (0x1), region = 62 }

</bundles_post_ra>
